<compile_context>
chip_gen: v5e
topology: v5e:2x2
jax: 0.10.0
libtpu: 0.0.40
codegen_flags: <defaults>
</compile_context>

<pallas_src>
import functools

import jax
import jax.numpy as jnp
from jax.experimental import pallas as pl
from jax.experimental.pallas import tpu as pltpu


# ----------------------------------------------------------------------------
# Kernel
# ----------------------------------------------------------------------------
def node_model_kernel(recv_ref, edge_ref, nodes_ref,
                      w1a_ref, w1b_ref, b1_ref, w2_ref, b2_ref,
                      out_ref, acc_ref):
    """Grid = (N_tiles [parallel], E_tiles [arbitrary/reduction])."""
    ei = pl.program_id(1)
    tile_n = acc_ref.shape[0]
    tile_e = recv_ref.shape[1]

    @pl.when(ei == 0)
    def _init():
        acc_ref[...] = jnp.zeros_like(acc_ref)

    # --- received-edges -> node aggregation (reduce='sum') via one-hot matmul.
    # One-hot is built directly in [tile_n, tile_e] layout (row = global node
    # id of this N-tile, col = edge of this E-tile): no transpose, pure VPU
    # compare + cast, then straight into the MXU in bf16 with f32 accumulation.
    node_ids = (pl.program_id(0) * tile_n
                + jax.lax.broadcasted_iota(jnp.int32, (tile_n, tile_e), 0))
    one_hot = (node_ids == recv_ref[...]).astype(jnp.bfloat16)   # [tile_n, tile_e]
    acc_ref[...] += jnp.dot(one_hot, edge_ref[...],
                            preferred_element_type=jnp.float32)  # [tile_n, F_e_p]

    # --- phi_node MLP on the last E-tile; concat([agg, nodes]) folded into
    #     split W1 (W1a rows multiply agg, W1b rows multiply nodes).
    @pl.when(ei == pl.num_programs(1) - 1)
    def _finalize():
        agg = acc_ref[...].astype(jnp.bfloat16)
        h = (jnp.dot(agg, w1a_ref[...], preferred_element_type=jnp.float32)
             + jnp.dot(nodes_ref[...], w1b_ref[...],
                       preferred_element_type=jnp.float32)
             + b1_ref[...])
        h = jnp.maximum(h, 0.0).astype(jnp.bfloat16)             # ReLU
        out_ref[...] = (jnp.dot(h, w2_ref[...],
                                preferred_element_type=jnp.float32)
                        + b2_ref[...])


# ----------------------------------------------------------------------------
# Wrapper
# ----------------------------------------------------------------------------
def _round_up(x, m):
    return ((x + m - 1) // m) * m


def _pad2d(a, rows, cols, dtype):
    out = jnp.zeros((rows, cols), dtype)
    return out.at[:a.shape[0], :a.shape[1]].set(a.astype(dtype))


def node_model_forward(nodes, edge_attr, edge_index, params,
                       *, tile_n=256, tile_e=512):
    """nodes [N,F_x] f32, edge_attr [E,F_e] f32, edge_index [2,E] int."""
    N, F_x = nodes.shape
    E, F_e = edge_attr.shape
    hidden = params["w1a"].shape[1]
    f_out = params["w2"].shape[1]

    # Lane-dense feature padding (multiples of 128) and (8,128)-aligned row
    # tiles.  Tiles are clamped so tiny demo problems don't over-pad.
    F_e_p = _round_up(F_e, 128)
    F_x_p = _round_up(F_x, 128)
    H_p = _round_up(hidden, 128)
    F_o_p = _round_up(f_out, 128)

    tile_n = min(tile_n, _round_up(N, 128))
    tile_e = min(tile_e, _round_up(E, 128))
    N_p = _round_up(N, tile_n)
    E_p = _round_up(E, tile_e)

    # bf16 operands at the call boundary; biases stay f32 (added post-MXU).
    nodes_p = _pad2d(nodes, N_p, F_x_p, jnp.bfloat16)
    edge_p = _pad2d(edge_attr, E_p, F_e_p, jnp.bfloat16)
    recv_p = jnp.full((1, E_p), -1, jnp.int32)
    recv_p = recv_p.at[0, :E].set(edge_index[1, :].astype(jnp.int32))

    w1a_p = _pad2d(params["w1a"], F_e_p, H_p, jnp.bfloat16)
    w1b_p = _pad2d(params["w1b"], F_x_p, H_p, jnp.bfloat16)
    b1_p = _pad2d(params["b1"], 1, H_p, jnp.float32)
    w2_p = _pad2d(params["w2"], H_p, F_o_p, jnp.bfloat16)
    b2_p = _pad2d(params["b2"], 1, F_o_p, jnp.float32)

    grid = (N_p // tile_n, E_p // tile_e)

    def full_block(shape):
        return pl.BlockSpec(shape, lambda ni, ei: (0, 0))

    grid_spec = pltpu.PrefetchScalarGridSpec(
        num_scalar_prefetch=0,
        grid=grid,
        in_specs=[
            pl.BlockSpec((1, tile_e), lambda ni, ei: (0, ei)),      # receivers
            pl.BlockSpec((tile_e, F_e_p), lambda ni, ei: (ei, 0)),  # edge_attr
            pl.BlockSpec((tile_n, F_x_p), lambda ni, ei: (ni, 0)),  # nodes
            full_block((F_e_p, H_p)),                               # W1a
            full_block((F_x_p, H_p)),                               # W1b
            full_block((1, H_p)),                                   # b1
            full_block((H_p, F_o_p)),                               # W2
            full_block((1, F_o_p)),                                 # b2
        ],
        out_specs=pl.BlockSpec((tile_n, F_o_p), lambda ni, ei: (ni, 0)),
        scratch_shapes=[pltpu.VMEM((tile_n, F_e_p), jnp.float32)],  # agg acc
    )

    out_p = pl.pallas_call(
        node_model_kernel,
        out_shape=jax.ShapeDtypeStruct((N_p, F_o_p), jnp.float32),
        grid_spec=grid_spec,
        compiler_params=pltpu.CompilerParams(
            dimension_semantics=("parallel", "arbitrary"),
            vmem_limit_bytes=48 * 1024 * 1024,  # headroom on v7x's 64 MiB VMEM
        ),
    )(recv_p, edge_p, nodes_p, w1a_p, w1b_p, b1_p, w2_p, b2_p)

    return out_p[:N, :f_out]


# ----------------------------------------------------------------------------
# Pure-JAX references
# ----------------------------------------------------------------------------
def node_model_reference(nodes, edge_attr, edge_index, params,
                         mirror_bf16=False):
    """Mirrors the PyTorch module. If mirror_bf16, reproduces the kernel's
    bf16-operand / f32-accumulation policy exactly."""
    N = nodes.shape[0]
    recv = edge_index[1, :]

    if mirror_bf16:
        cast = lambda a: a.astype(jnp.bfloat16).astype(jnp.float32)
    else:
        cast = lambda a: a

    agg = jax.ops.segment_sum(cast(edge_attr), recv, num_segments=N)
    agg = cast(agg)
    x_nodes = cast(nodes)
    h = (agg @ cast(params["w1a"]) + x_nodes @ cast(params["w1b"])
         + params["b1"])
    h = cast(jnp.maximum(h, 0.0))
    return h @ cast(params["w2"]) + params["b2"]


def make_params(key, f_e, f_x, hidden, f_out):
    k1, k2, k3, k4 = jax.random.split(key, 4)
    scale_in = 1.0 / jnp.sqrt(f_e + f_x)
    scale_h = 1.0 / jnp.sqrt(hidden)
    w1 = jax.random.normal(k1, (f_e + f_x, hidden), jnp.float32) * scale_in
    return {
        "w1a": w1[:f_e, :],
        "w1b": w1[f_e:, :],
        "b1": jax.random.normal(k2, (1, hidden), jnp.float32) * 0.01,
        "w2": jax.random.normal(k3, (hidden, f_out), jnp.float32) * scale_h,
        "b2": jax.random.normal(k4, (1, f_out), jnp.float32) * 0.01,
    }


if __name__ == "__main__":
    key = jax.random.PRNGKey(0)
    k_nodes, k_edges, k_send, k_recv, k_params = jax.random.split(key, 5)

    N, E = 16, 32          # nodes, edges
    F_x, F_e = 8, 8        # node / edge feature dims
    HIDDEN, F_OUT = 32, 8  # phi_node MLP dims

    nodes = jax.random.normal(k_nodes, (N, F_x), jnp.float32)
    edge_attr = jax.random.normal(k_edges, (E, F_e), jnp.float32)
    senders = jax.random.randint(k_send, (E,), 0, N, jnp.int32)
    receivers = jax.random.randint(k_recv, (E,), 0, N, jnp.int32)
    edge_index = jnp.stack([senders, receivers], axis=0)  # [2, E]

    params = make_params(k_params, F_e, F_x, HIDDEN, F_OUT)

    out = node_model_forward(nodes, edge_attr, edge_index, params)
    jax.block_until_ready(out)

    ref_mirror = node_model_reference(nodes, edge_attr, edge_index, params,
                                      mirror_bf16=True)
    ref_f32 = node_model_reference(nodes, edge_attr, edge_index, params,
                                   mirror_bf16=False)

    assert out.shape == (N, F_OUT)
    # Exact-path check (same bf16 operand rounding, f32 accumulation).
    assert jnp.allclose(out, ref_mirror, atol=1e-3, rtol=1e-3), \
        "mismatch vs bf16-mirrored reference"
    # Semantic check vs full-f32 reference (bf16 operand rounding tolerance).
    assert jnp.allclose(out, ref_f32, atol=7.5e-2, rtol=7.5e-2), \
        "mismatch vs f32 reference"

    print("KERNEL_OK")
</pallas_src>

<mosaic_0001>
module attributes {stable_mosaic.version = 11 : i64} {
  func.func @node_model_kernel(%arg0: i32, %arg1: i32, %arg2: memref<1x128xi32, #tpu.memory_space<vmem>>, %arg3: memref<128x128xbf16, #tpu.memory_space<vmem>>, %arg4: memref<128x128xbf16, #tpu.memory_space<vmem>>, %arg5: memref<128x128xbf16, #tpu.memory_space<vmem>>, %arg6: memref<128x128xbf16, #tpu.memory_space<vmem>>, %arg7: memref<1x128xf32, #tpu.memory_space<vmem>>, %arg8: memref<128x128xbf16, #tpu.memory_space<vmem>>, %arg9: memref<1x128xf32, #tpu.memory_space<vmem>>, %arg10: memref<128x128xf32, #tpu.memory_space<vmem>>, %arg11: memref<128x128xf32, #tpu.memory_space<vmem>>) attributes {dimension_semantics = [#tpu.dimension_semantics<parallel>, #tpu.dimension_semantics<arbitrary>], iteration_bounds = array<i64: 1, 1>, scalar_prefetch = 0 : i64, scratch_operands = 1 : i64, tpu.core_type = #tpu.core_type<tc>, window_params = [{transform_indices = @transform_0, window_bounds = array<i64: 1, 128>}, {transform_indices = @transform_1, window_bounds = array<i64: 128, 128>}, {transform_indices = @transform_2, window_bounds = array<i64: 128, 128>}, {pipeline_mode = #tpu.pipeline_mode<synchronous>, transform_indices = @transform_3, window_bounds = array<i64: 128, 128>}, {pipeline_mode = #tpu.pipeline_mode<synchronous>, transform_indices = @transform_4, window_bounds = array<i64: 128, 128>}, {pipeline_mode = #tpu.pipeline_mode<synchronous>, transform_indices = @transform_5, window_bounds = array<i64: 1, 128>}, {pipeline_mode = #tpu.pipeline_mode<synchronous>, transform_indices = @transform_6, window_bounds = array<i64: 128, 128>}, {pipeline_mode = #tpu.pipeline_mode<synchronous>, transform_indices = @transform_7, window_bounds = array<i64: 1, 128>}, {transform_indices = @transform_8, window_bounds = array<i64: 128, 128>}]} {
    %c0_i32 = arith.constant 0 : i32
    %0 = arith.cmpi eq, %arg1, %c0_i32 : i32
    %1 = arith.extui %0 : i1 to i32
    %c0_i32_0 = arith.constant 0 : i32
    %2 = arith.cmpi ne, %1, %c0_i32_0 : i32
    scf.if %2 {
      %cst_10 = arith.constant 0.000000e+00 : f32
      %21 = vector.broadcast %cst_10 : f32 to vector<128x128xf32>
      %c0_11 = arith.constant 0 : index
      %c0_12 = arith.constant 0 : index
      %22 = vector.load %arg11[%c0_11, %c0_12] : memref<128x128xf32, #tpu.memory_space<vmem>>, vector<128x128xf32>
      tpu.vector_store %arg11[%c0_11, %c0_12], %21 {strides = array<i32>} : memref<128x128xf32, #tpu.memory_space<vmem>>, vector<128x128xf32>,
    } else {
    }
    %c128_i32 = arith.constant 128 : i32
    %3 = arith.muli %arg0, %c128_i32 : i32
    %4 = tpu.iota {dimensions = array<i32: 0>} : vector<128x128xi32>
    %5 = vector.broadcast %3 : i32 to vector<128x128xi32>
    %6 = arith.addi %5, %4 : vector<128x128xi32>
    %c0 = arith.constant 0 : index
    %c0_1 = arith.constant 0 : index
    %7 = vector.load %arg2[%c0, %c0_1] : memref<1x128xi32, #tpu.memory_space<vmem>>, vector<1x128xi32>
    %8 = vector.broadcast %7 : vector<1x128xi32> to vector<128x128xi32>
    %9 = arith.cmpi eq, %6, %8 : vector<128x128xi32>
    %10 = arith.extui %9 : vector<128x128xi1> to vector<128x128xi32>
    %11 = arith.sitofp %10 : vector<128x128xi32> to vector<128x128xf32>
    %12 = arith.truncf %11 : vector<128x128xf32> to vector<128x128xbf16>
    %c0_2 = arith.constant 0 : index
    %c0_3 = arith.constant 0 : index
    %13 = vector.load %arg11[%c0_2, %c0_3] : memref<128x128xf32, #tpu.memory_space<vmem>>, vector<128x128xf32>
    %c0_4 = arith.constant 0 : index
    %c0_5 = arith.constant 0 : index
    %14 = vector.load %arg3[%c0_4, %c0_5] : memref<128x128xbf16, #tpu.memory_space<vmem>>, vector<128x128xbf16>
    %cst = arith.constant dense<0.000000e+00> : vector<128x128xf32>
    %15 = tpu.matmul %12, %14, %cst {dimension_numbers = #tpu.dot_dimension_numbers<[1], [0], [0], [1], [0, 0, 1, 1], [], []>} : vector<128x128xbf16>, vector<128x128xbf16>, vector<128x128xf32> -> vector<128x128xf32>
    %16 = arith.addf %13, %15 : vector<128x128xf32>
    %c0_6 = arith.constant 0 : index
    %c0_7 = arith.constant 0 : index
    %17 = vector.load %arg11[%c0_6, %c0_7] : memref<128x128xf32, #tpu.memory_space<vmem>>, vector<128x128xf32>
    tpu.vector_store %arg11[%c0_6, %c0_7], %16 {strides = array<i32>} : memref<128x128xf32, #tpu.memory_space<vmem>>, vector<128x128xf32>,
    %c0_i32_8 = arith.constant 0 : i32
    %18 = arith.cmpi eq, %arg1, %c0_i32_8 : i32
    %19 = arith.extui %18 : i1 to i32
    %c0_i32_9 = arith.constant 0 : i32
    %20 = arith.cmpi ne, %19, %c0_i32_9 : i32
    scf.if %20 {
      %c0_10 = arith.constant 0 : index
      %c0_11 = arith.constant 0 : index
      %21 = vector.load %arg11[%c0_10, %c0_11] : memref<128x128xf32, #tpu.memory_space<vmem>>, vector<128x128xf32>
      %22 = arith.truncf %21 : vector<128x128xf32> to vector<128x128xbf16>
      %c0_12 = arith.constant 0 : index
      %c0_13 = arith.constant 0 : index
      %23 = vector.load %arg5[%c0_12, %c0_13] : memref<128x128xbf16, #tpu.memory_space<vmem>>, vector<128x128xbf16>
      %cst_14 = arith.constant dense<0.000000e+00> : vector<128x128xf32>
      %24 = tpu.matmul %22, %23, %cst_14 {dimension_numbers = #tpu.dot_dimension_numbers<[1], [0], [0], [1], [0, 0, 1, 1], [], []>} : vector<128x128xbf16>, vector<128x128xbf16>, vector<128x128xf32> -> vector<128x128xf32>
      %c0_15 = arith.constant 0 : index
      %c0_16 = arith.constant 0 : index
      %25 = vector.load %arg4[%c0_15, %c0_16] : memref<128x128xbf16, #tpu.memory_space<vmem>>, vector<128x128xbf16>
      %c0_17 = arith.constant 0 : index
      %c0_18 = arith.constant 0 : index
      %26 = vector.load %arg6[%c0_17, %c0_18] : memref<128x128xbf16, #tpu.memory_space<vmem>>, vector<128x128xbf16>
      %cst_19 = arith.constant dense<0.000000e+00> : vector<128x128xf32>
      %27 = tpu.matmul %25, %26, %cst_19 {dimension_numbers = #tpu.dot_dimension_numbers<[1], [0], [0], [1], [0, 0, 1, 1], [], []>} : vector<128x128xbf16>, vector<128x128xbf16>, vector<128x128xf32> -> vector<128x128xf32>
      %28 = arith.addf %24, %27 : vector<128x128xf32>
      %c0_20 = arith.constant 0 : index
      %c0_21 = arith.constant 0 : index
      %29 = vector.load %arg7[%c0_20, %c0_21] : memref<1x128xf32, #tpu.memory_space<vmem>>, vector<1x128xf32>
      %30 = vector.broadcast %29 : vector<1x128xf32> to vector<128x128xf32>
      %31 = arith.addf %28, %30 : vector<128x128xf32>
      %cst_22 = arith.constant 0.000000e+00 : f32
      %32 = vector.broadcast %cst_22 : f32 to vector<128x128xf32>
      %33 = arith.maximumf %31, %32 : vector<128x128xf32>
      %34 = arith.truncf %33 : vector<128x128xf32> to vector<128x128xbf16>
      %c0_23 = arith.constant 0 : index
      %c0_24 = arith.constant 0 : index
      %35 = vector.load %arg8[%c0_23, %c0_24] : memref<128x128xbf16, #tpu.memory_space<vmem>>, vector<128x128xbf16>
      %cst_25 = arith.constant dense<0.000000e+00> : vector<128x128xf32>
      %36 = tpu.matmul %34, %35, %cst_25 {dimension_numbers = #tpu.dot_dimension_numbers<[1], [0], [0], [1], [0, 0, 1, 1], [], []>} : vector<128x128xbf16>, vector<128x128xbf16>, vector<128x128xf32> -> vector<128x128xf32>
      %c0_26 = arith.constant 0 : index
      %c0_27 = arith.constant 0 : index
      %37 = vector.load %arg9[%c0_26, %c0_27] : memref<1x128xf32, #tpu.memory_space<vmem>>, vector<1x128xf32>
      %38 = vector.broadcast %37 : vector<1x128xf32> to vector<128x128xf32>
      %39 = arith.addf %36, %38 : vector<128x128xf32>
      %c0_28 = arith.constant 0 : index
      %c0_29 = arith.constant 0 : index
      %40 = vector.load %arg10[%c0_28, %c0_29] : memref<128x128xf32, #tpu.memory_space<vmem>>, vector<128x128xf32>
      tpu.vector_store %arg10[%c0_28, %c0_29], %39 {strides = array<i32>} : memref<128x128xf32, #tpu.memory_space<vmem>>, vector<128x128xf32>,
    } else {
    }
    return
  }
  func.func @transform_0(%arg0: i32, %arg1: i32) -> (i32, i32) {
    %c0_i32 = arith.constant 0 : i32
    %c0_i32_0 = arith.constant 0 : i32
    return %c0_i32, %arg1 : i32, i32
  }
  func.func @transform_1(%arg0: i32, %arg1: i32) -> (i32, i32) {
    %c0_i32 = arith.constant 0 : i32
    %c0_i32_0 = arith.constant 0 : i32
    return %arg1, %c0_i32 : i32, i32
  }
  func.func @transform_2(%arg0: i32, %arg1: i32) -> (i32, i32) {
    %c0_i32 = arith.constant 0 : i32
    %c0_i32_0 = arith.constant 0 : i32
    return %arg0, %c0_i32 : i32, i32
  }
  func.func @transform_3(%arg0: i32, %arg1: i32) -> (i32, i32) {
    %c0_i32 = arith.constant 0 : i32
    %c0_i32_0 = arith.constant 0 : i32
    %c0_i32_1 = arith.constant 0 : i32
    return %c0_i32, %c0_i32_0 : i32, i32
  }
  func.func @transform_4(%arg0: i32, %arg1: i32) -> (i32, i32) {
    %c0_i32 = arith.constant 0 : i32
    %c0_i32_0 = arith.constant 0 : i32
    %c0_i32_1 = arith.constant 0 : i32
    return %c0_i32, %c0_i32_0 : i32, i32
  }
  func.func @transform_5(%arg0: i32, %arg1: i32) -> (i32, i32) {
    %c0_i32 = arith.constant 0 : i32
    %c0_i32_0 = arith.constant 0 : i32
    %c0_i32_1 = arith.constant 0 : i32
    return %c0_i32, %c0_i32_0 : i32, i32
  }
  func.func @transform_6(%arg0: i32, %arg1: i32) -> (i32, i32) {
    %c0_i32 = arith.constant 0 : i32
    %c0_i32_0 = arith.constant 0 : i32
    %c0_i32_1 = arith.constant 0 : i32
    return %c0_i32, %c0_i32_0 : i32, i32
  }
  func.func @transform_7(%arg0: i32, %arg1: i32) -> (i32, i32) {
    %c0_i32 = arith.constant 0 : i32
    %c0_i32_0 = arith.constant 0 : i32
    %c0_i32_1 = arith.constant 0 : i32
    return %c0_i32, %c0_i32_0 : i32, i32
  }
  func.func @transform_8(%arg0: i32, %arg1: i32) -> (i32, i32) {
    %c0_i32 = arith.constant 0 : i32
    %c0_i32_0 = arith.constant 0 : i32
    return %arg0, %c0_i32 : i32, i32
  }
}

</mosaic_0001>

<bundles_post_ra>
// kernel: tpu_custom_call.1
= control target key start
LH: loop header
LB: loop body
LE: loop exit
PB: predicated region body
PF: predicated region fallthrough
CT: control target
= control target key end

     0   :  { %13 = vsyncpa [#allocation4], 0  ;;  %s1498_s0 = inlined_call_operand.hbm [shape: s32[1,128], index: 0, kind: input, shape index: {}]   ;;  %s1499_s1 = inlined_call_operand.hbm [shape: bf16[128,128], index: 1, kind: input, shape index: {}]   ;;  %s1500_s2 = inlined_call_operand.hbm [shape: bf16[128,128], index: 2, kind: input, shape index: {}]   ;;  %s1501_s3 = inlined_call_operand.hbm [shape: bf16[128,128], index: 3, kind: input, shape index: {}]   ;;  %s1502_s4 = inlined_call_operand.hbm [shape: bf16[128,128], index: 4, kind: input, shape index: {}]   ;;  %s1503_s5 = inlined_call_operand.vmem [shape: f32[1,128], index: 5, kind: input, shape index: {}]   ;;  %s1504_s6 = inlined_call_operand.hbm [shape: bf16[128,128], index: 6, kind: input, shape index: {}]   ;;  %s1505_s7 = inlined_call_operand.vmem [shape: f32[1,128], index: 7, kind: input, shape index: {}]   ;;  %s1506_s8 = inlined_call_operand.hbm [shape: f32[128,128], index: 8, kind: output, shape index: {}]  }
   0x1   :  { %14 = vsyncpa [#allocation7], 0 }
   0x2   :  { %15 = vsyncpa [#allocation10], 0 }
   0x3   :  { %16 = vsyncpa [#allocation13], 0  ;;  %s33_s29 = sshll.u32 %s1499_s1, 4  ;;  %s34_s29 = int_to_ptr.hbm [resolvable:$true] %s33_s29 }
   0x4   :  { %17 = vsyncpa [#allocation5], 0  ;;  %s1337_s30 = smov [#allocation6]   ;;  %s59_s12 = sshll.u32 %s1501_s3, 4  ;;  %s60_s12 = int_to_ptr.hbm [resolvable:$true] %s59_s12 }
   0x5   :  { %s35_s9 = sshll.u32 %s1337_s30, 4  ;;  %s1338_s13 = smov 64   ;;  %s36_s9 = int_to_ptr.vmem [resolvable:$true] %s35_s9 }
   0x6   :  { %s1339_s14 = smov 4   ;;  %s1340_s15 = smov [#allocation9]  }
   0x7   :  { %41 = dma.hbm_to_vmem [thread:$0]  %s34_s29, 1024, %s36_s9, [#allocation7], %s1338_s13, %s1338_s13, %s1339_s14  }
   0x8   :  { %s61_s16 = sshll.u32 %s1340_s15, 4  ;;  %s23_s18 = sshll.u32 %s1498_s0, 4  ;;  %s62_s16 = int_to_ptr.vmem [resolvable:$true] %s61_s16  ;;  %s24_s18 = int_to_ptr.hbm [resolvable:$true] %s23_s18 }
   0x9   :  { %67 = dma.hbm_to_vmem [thread:$0]  %s60_s12, 1024, %s62_s16, [#allocation10], %s1338_s13, %s1338_s13, %s1339_s14  }
   0xa   :  { %s46_s20 = sshll.u32 %s1500_s2, 4  ;;  %s1341_s21 = smov [#allocation3]   ;;  %s47_s20 = int_to_ptr.hbm [resolvable:$true] %s46_s20 }
   0xb   :  { %s25_s22 = sshll.u32 %s1341_s21, 4  ;;  %s1342_s23 = smov [#allocation8]   ;;  %s26_s22 = int_to_ptr.vmem [resolvable:$true] %s25_s22 }
   0xc   :  { %28 = dma.hbm_to_vmem [thread:$0]  %s24_s18, 16, %s26_s22, [#allocation4]  }
   0xd   :  { %s48_s24 = sshll.u32 %s1342_s23, 4  ;;  %s72_s0 = sshll.u32 %s1502_s4, 4  ;;  %s49_s24 = int_to_ptr.vmem [resolvable:$true] %s48_s24  ;;  %s73_s0 = int_to_ptr.hbm [resolvable:$true] %s72_s0 }
   0xe   :  { %54 = dma.hbm_to_vmem [thread:$0]  %s47_s20, 1024, %s49_s24, [#allocation7], %s1338_s13, %s1338_s13, %s1339_s14  }
   0xf   :  { %s87_s2 = sshll.u32 %s1504_s6, 4  ;;  %s1343_s29 = smov [#allocation11]   ;;  %s88_s2 = int_to_ptr.hbm [resolvable:$true] %s87_s2 }
  0x10   :  { %s74_s30 = sshll.u32 %s1343_s29, 4  ;;  %s1344_s9 = smov [#allocation12]   ;;  %s75_s30 = int_to_ptr.vmem [resolvable:$true] %s74_s30 }
  0x11   :  { %80 = dma.hbm_to_vmem [thread:$0]  %s73_s0, 1024, %s75_s30, [#allocation10], %s1338_s13, %s1338_s13, %s1339_s14  }
  0x12   :  { %s89_s4 = sshll.u32 %s1344_s9, 4  ;;  %s90_s4 = int_to_ptr.vmem [resolvable:$true] %s89_s4 }
  0x13   :  { %95 = dma.hbm_to_vmem [thread:$0]  %s88_s2, 1024, %s90_s4, [#allocation13], %s1338_s13, %s1338_s13, %s1339_s14  }
  0x14   :  { %1327 = dma.done.wait [#allocation4], 16  }
  0x15   :  { %1328 = vsyncadd [#allocation4], 4294967280 }
  0x16   :  { %1329 = dma.done.wait [#allocation7], 2048  }
  0x17   :  { %1330 = vsyncadd [#allocation7], 4294965248 }
  0x18   :  { %1331 = dma.done.wait [#allocation10], 2048  }
  0x19   :  { %1332 = vsyncadd [#allocation10], 4294965248 }
  0x1a   :  { %1333 = dma.done.wait [#allocation13], 1024  }
  0x1b   :  { %1334 = vsyncadd [#allocation13], 4294966272  ;;  %v1111_v0 = vld [vmem:[#allocation6 + $0x38] sm:$0xff]  ;;  %v1110_v1 = vld [vmem:[#allocation6 + $0x30] sm:$0xff]  ;;  %v143_v5 = vlaneseq  ;;  %v1345_v12 = vmov 1.0|1.0  }
  0x1c   :  { %315 = vmatpush.bf16.msra.mxu0 %v1111_v0  ;;  %v1109_v2 = vld [vmem:[#allocation6 + $0x28] sm:$0xff]  ;;  %v1108_v3 = vld [vmem:[#allocation6 + $0x20] sm:$0xff]  ;;  %v1107_v4 = vld [vmem:[#allocation6 + $0x18] sm:$0xff]  ;;  %s896_s15 = sshll.u32 %s1506_s8, 4  ;;  %s1347_s16 = smov 128   ;;  %s897_s15 = int_to_ptr.hbm [resolvable:$true] %s896_s15 }
  0x1d   :  { %v1106_v6 = vld [vmem:[#allocation6 + $0x10] sm:$0xff]  ;;  %v1427_v7 = vshrl.u32 %v143_v5, 7  ;;  %v1105_v8 = vld [vmem:[#allocation6 + $0x8] sm:$0xff]  ;;  %v1430_v10 = vld [vmem:[#allocation3] ss:$0 sm:$0xff]  ;;  %s1348_s17 = smov 8  }
  0x1e   :  { %v1104_v11 = vld [vmem:[#allocation6] sm:$0xff]  ;;  %v1135_v21 = vld [vmem:[#allocation11 + $0x38] sm:$0xff]  ;;  %v1134_v23 = vld [vmem:[#allocation11 + $0x30] sm:$0xff] }
  0x1f   :  { %v145_v9 = vadd.s32 8, %v1427_v7  ;;  %vm179_vm0 = vcmp.eq.s32.totalorder %v1427_v7, %v1430_v10  ;;  %v146_v13 = vadd.s32 16, %v1427_v7  ;;  %v147_v14 = vadd.s32 24, %v1427_v7  ;;  %v1119_v22 = vld [vmem:[#allocation9 + $0x38] sm:$0xff]  ;;  %567 = vmatpush.bf16.msra.mxu1 %v1135_v21  ;;  %v1118_v24 = vld [vmem:[#allocation9 + $0x30] sm:$0xff]  ;;  %v1133_v27 = vld [vmem:[#allocation11 + $0x28] sm:$0xff] }
  0x20   :  { %316 = vmatpush.bf16.msra.mxu0 %v1110_v1  ;;  %v148_v15 = vadd.s32 32, %v1427_v7  ;;  %v149_v16 = vadd.s32 40, %v1427_v7  ;;  %v150_v17 = vadd.s32 48, %v1427_v7  ;;  %v151_v18 = vadd.s32 56, %v1427_v7  ;;  %664 = vmatpush.bf16.msra.mxu2 %v1119_v22  ;;  %v1117_v28 = vld [vmem:[#allocation9 + $0x28] sm:$0xff]  ;;  %v1132_v29 = vld [vmem:[#allocation11 + $0x20] sm:$0xff] }
  0x21   :  { %vm180_vm1 = vcmp.eq.s32.totalorder %v145_v9, %v1430_v10  ;;  %vm181_vm3 = vcmp.eq.s32.totalorder %v146_v13, %v1430_v10  ;;  %vm182_vm4 = vcmp.eq.s32.totalorder %v147_v14, %v1430_v10  ;;  %v152_v19 = vadd.s32 64, %v1427_v7  ;;  %v1116_v30 = vld [vmem:[#allocation9 + $0x20] sm:$0xff]  ;;  %v1131_v31 = vld [vmem:[#allocation11 + $0x18] sm:$0xff]  ;;  %v1130_v35 = vld [vmem:[#allocation11 + $0x10] sm:$0xff] }
  0x22   :  { %vm960_vm2 = vmpackc.low %vm180_vm1, %vm179_vm0  ;;  %vm183_vm6 = vcmp.eq.s32.totalorder %v148_v15, %v1430_v10  ;;  %vm184_vm7 = vcmp.eq.s32.totalorder %v149_v16, %v1430_v10  ;;  %vm185_vm9 = vcmp.eq.s32.totalorder %v150_v17, %v1430_v10  ;;  %vm186_vm10 = vcmp.eq.s32.totalorder %v151_v18, %v1430_v10  ;;  %v1115_v32 = vld [vmem:[#allocation9 + $0x18] sm:$0xff]  ;;  %v1114_v36 = vld [vmem:[#allocation9 + $0x10] sm:$0xff] }
  0x23   :  { %vm962_vm5 = vmpackc.low %vm182_vm4, %vm181_vm3  ;;  %v153_v20 = vadd.s32 72, %v1427_v7  ;;  %vm187_vm12 = vcmp.eq.s32.totalorder %v152_v19, %v1430_v10  ;;  %v154_v25 = vadd.s32 80, %v1427_v7  ;;  %v155_v26 = vadd.s32 88, %v1427_v7  ;;  %568 = vmatpush.bf16.msra.mxu1 %v1134_v23  ;;  %v1129_v37 = vld [vmem:[#allocation11 + $0x8] sm:$0xff]  ;;  %v1128_v39 = vld [vmem:[#allocation11] sm:$0xff] }
  0x24   :  { %317 = vmatpush.bf16.msra.mxu0 %v1109_v2  ;;  %vm964_vm8 = vmpackc.low %vm184_vm7, %vm183_vm6  ;;  %665 = vmatpush.bf16.msra.mxu2 %v1118_v24  ;;  %v156_v33 = vadd.s32 96, %v1427_v7  ;;  %v157_v34 = vadd.s32 104, %v1427_v7  ;;  %v1113_v38 = vld [vmem:[#allocation9 + $0x8] sm:$0xff]  ;;  %v1112_v40 = vld [vmem:[#allocation9] sm:$0xff]  ;;  %v158_v42 = vadd.s32 112, %v1427_v7  ;;  %v159_v43 = vadd.s32 120, %v1427_v7 }
  0x25   :  { %vm966_vm11 = vmpackc.low %vm186_vm10, %vm185_vm9  ;;  %vm188_vm13 = vcmp.eq.s32.totalorder %v153_v20, %v1430_v10  ;;  %vm189_vm15 = vcmp.eq.s32.totalorder %v154_v25, %v1430_v10  ;;  %vm190_vm0 = vcmp.eq.s32.totalorder %v155_v26, %v1430_v10  ;;  %v1120_v41 = vld [vmem:[#allocation8] sm:$0xff]  ;;  %v1121_v44 = vld [vmem:[#allocation8 + $0x8] sm:$0xff] }
  0x26   :  { %vm968_vm14 = vmpackc.low %vm188_vm13, %vm187_vm12  ;;  %vm192_vm3 = vcmp.eq.s32.totalorder %v157_v34, %v1430_v10  ;;  %vm194_vm6 = vcmp.eq.s32.totalorder %v159_v43, %v1430_v10  ;;  %v1122_v46 = vld [vmem:[#allocation8 + $0x10] sm:$0xff]  ;;  %v1123_v50 = vld [vmem:[#allocation8 + $0x18] sm:$0xff] }
  0x27   :  { %569 = vmatpush.bf16.msra.mxu1 %v1133_v27  ;;  %vm970_vm1 = vmpackc.low %vm190_vm0, %vm189_vm15  ;;  %v1124_v54 = vld [vmem:[#allocation8 + $0x20] sm:$0xff]  ;;  %v1125_v58 = vld [vmem:[#allocation8 + $0x28] sm:$0xff] }
  0x28   :  { %318 = vmatpush.bf16.msra.mxu0 %v1108_v3  ;;  %666 = vmatpush.bf16.msra.mxu2 %v1117_v28  ;;  %v1126_v62 = vld [vmem:[#allocation8 + $0x30] sm:$0xff]  ;;  %v1127_v2 = vld [vmem:[#allocation8 + $0x38] sm:$0xff]  ;;  %v1140_v9 = vld [vmem:[#allocation12 + $0x20] sm:$0xff] }
  0x29   :  { %v1143_v5 = vld [vmem:[#allocation12 + $0x38] sm:$0xff]  ;;  %v1138_v15 = vld [vmem:[#allocation12 + $0x10] sm:$0xff]  ;;  %v1137_v16 = vld [vmem:[#allocation12 + $0x8] sm:$0xff] }
  0x2a   :  { %825 = vmatpush.bf16.msra.mxu3 %v1143_v5  ;;  %v1136_v20 = vld [vmem:[#allocation12] sm:$0xff]  ;;  %v1474_v25 = vld [vmem:[%s1503_s5] ss:$0 sm:$0xff] }
  0x2b   :  { %570 = vmatpush.bf16.msra.mxu1 %v1132_v29 }
  0x2c   :  { %319 = vmatpush.bf16.msra.mxu0 %v1107_v4  ;;  %667 = vmatpush.bf16.msra.mxu2 %v1116_v30 }
  0x2f   :  { %571 = vmatpush.bf16.msra.mxu1 %v1131_v31 }
  0x30   :  { %320 = vmatpush.bf16.msra.mxu0 %v1106_v6  ;;  %668 = vmatpush.bf16.msra.mxu2 %v1115_v32  ;;  %v1142_v6 = vld [vmem:[#allocation12 + $0x30] sm:$0xff] }
  0x31   :  { %826 = vmatpush.bf16.msra.mxu3 %v1142_v6 }
  0x33   :  { %572 = vmatpush.bf16.msra.mxu1 %v1130_v35 }
  0x34   :  { %321 = vmatpush.bf16.msra.mxu0 %v1105_v8  ;;  %669 = vmatpush.bf16.msra.mxu2 %v1114_v36  ;;  %v1141_v8 = vld [vmem:[#allocation12 + $0x28] sm:$0xff] }
  0x35   :  { %827 = vmatpush.bf16.msra.mxu3 %v1141_v8 }
  0x37   :  { %573 = vmatpush.bf16.msra.mxu1 %v1129_v37 }
  0x38   :  { %322 = vmatpush.bf16.msra.mxu0 %v1104_v11  ;;  %670 = vmatpush.bf16.msra.mxu2 %v1113_v38 }
  0x39   :  { %828 = vmatpush.bf16.msra.mxu3 %v1140_v9 }
  0x3b   :  { %961 = vmatmul.msk.bf16.vlgmr.msra.gmra.mxu0 %vm960_vm2, %v1345_v12  ;;  %vm191_vm2 = vcmp.eq.s32.totalorder %v156_v33, %v1430_v10  ;;  %574 = vmatpush.bf16.msra.mxu1 %v1128_v39 }
  0x3c   :  { %vm972_vm4 = vmpackc.low %vm192_vm3, %vm191_vm2  ;;  %671 = vmatpush.bf16.msra.mxu2 %v1112_v40 }
  0x3e   :  { %575 = vmatmul.bf16.vlgmr.msra.gmra.mxu1 %v1120_v41 }
  0x4b   :  { %963 = vmatmul.msk.bf16.gmra.mxu0 %vm962_vm5, %v1345_v12  ;;  %vm193_vm5 = vcmp.eq.s32.totalorder %v158_v42, %v1430_v10 }
  0x4c   :  { %vm974_vm7 = vmpackc.low %vm194_vm6, %vm193_vm5 }
  0x4e   :  { %580 = vmatmul.bf16.gmra.mxu1 %v1121_v44 }
  0x5b   :  { %965 = vmatmul.msk.bf16.gmra.mxu0 %vm964_vm8, %v1345_v12 }
  0x5e   :  { %585 = vmatmul.bf16.gmra.mxu1 %v1122_v46 }
  0x6b   :  { %967 = vmatmul.msk.bf16.gmra.mxu0 %vm966_vm11, %v1345_v12 }
  0x6e   :  { %590 = vmatmul.bf16.gmra.mxu1 %v1123_v50 }
  0x7b   :  { %969 = vmatmul.msk.bf16.gmra.mxu0 %vm968_vm14, %v1345_v12 }
  0x7e   :  { %595 = vmatmul.bf16.gmra.mxu1 %v1124_v54 }
  0x8b   :  { %971 = vmatmul.msk.bf16.gmra.mxu0 %vm970_vm1, %v1345_v12 }
  0x8e   :  { %600 = vmatmul.bf16.gmra.mxu1 %v1125_v58 }
  0x9b   :  { %973 = vmatmul.msk.bf16.gmra.mxu0 %vm972_vm4, %v1345_v12 }
  0x9e   :  { %605 = vmatmul.bf16.gmra.mxu1 %v1126_v62 }
  0xab   :  { %975 = vmatmul.msk.bf16.gmra.mxu0 %vm974_vm7, %v1345_v12  ;;  %v1139_v12 = vld [vmem:[#allocation12 + $0x18] sm:$0xff] }
  0xac   :  { %829 = vmatpush.bf16.msra.mxu3 %v1139_v12 }
  0xae   :  { %610 = vmatmul.bf16.gmra.mxu1 %v1127_v2 }
  0xb0   :  { %830 = vmatpush.bf16.msra.mxu3 %v1138_v15 }
  0xb4   :  { %831 = vmatpush.bf16.msra.mxu3 %v1137_v16 }
  0xb8   :  { %v324_v45 = vpop.f32.mrf.mxu0  ;;  %832 = vmatpush.bf16.msra.mxu3 %v1136_v20 }
  0xbb   :  { %v576_v14 = vpop.f32.mrf.mxu1 }
  0xc0   :  { %v326_v47 = vpop.f32.mrf.mxu0 }
  0xc1   :  { %v415_v48 = vpack.c.bf16 %v326_v47, %v324_v45 }
  0xc3   :  { %672 = vmatmul.bf16.vlgmr.msra.gmra.mxu2 %v415_v48  ;;  %v578_v19 = vpop.f32.mrf.mxu1 }
  0xc8   :  { %v329_v49 = vpop.f32.mrf.mxu0 }
  0xcb   :  { %v581_v21 = vpop.f32.mrf.mxu1 }
  0xd0   :  { %v331_v51 = vpop.f32.mrf.mxu0 }
  0xd1   :  { %v416_v52 = vpack.c.bf16 %v331_v51, %v329_v49 }
  0xd3   :  { %677 = vmatmul.bf16.gmra.mxu2 %v416_v52  ;;  %v583_v23 = vpop.f32.mrf.mxu1 }
  0xd8   :  { %v334_v53 = vpop.f32.mrf.mxu0 }
  0xdb   :  { %v586_v29 = vpop.f32.mrf.mxu1 }
  0xe0   :  { %v336_v55 = vpop.f32.mrf.mxu0 }
  0xe1   :  { %v417_v56 = vpack.c.bf16 %v336_v55, %v334_v53 }
  0xe3   :  { %682 = vmatmul.bf16.gmra.mxu2 %v417_v56  ;;  %v588_v35 = vpop.f32.mrf.mxu1 }
  0xe8   :  { %v339_v57 = vpop.f32.mrf.mxu0 }
  0xeb   :  { %v591_v43 = vpop.f32.mrf.mxu1 }
  0xf0   :  { %v341_v59 = vpop.f32.mrf.mxu0 }
  0xf1   :  { %v418_v60 = vpack.c.bf16 %v341_v59, %v339_v57 }
  0xf3   :  { %687 = vmatmul.bf16.gmra.mxu2 %v418_v60  ;;  %v593_v48 = vpop.f32.mrf.mxu1 }
  0xf8   :  { %v344_v61 = vpop.f32.mrf.mxu0 }
  0xfb   :  { %v596_v56 = vpop.f32.mrf.mxu1 }
 0x100   :  { %v346_v63 = vpop.f32.mrf.mxu0 }
 0x101   :  { %v419_v0 = vpack.c.bf16 %v346_v63, %v344_v61 }
 0x103   :  { %692 = vmatmul.bf16.gmra.mxu2 %v419_v0  ;;  %v598_v62 = vpop.f32.mrf.mxu1 }
 0x108   :  { %v349_v1 = vpop.f32.mrf.mxu0 }
 0x110   :  { %v351_v3 = vpop.f32.mrf.mxu0 }
 0x111   :  { %v420_v4 = vpack.c.bf16 %v351_v3, %v349_v1 }
 0x113   :  { %697 = vmatmul.bf16.gmra.mxu2 %v420_v4  ;;  %v601_v4 = vpop.f32.mrf.mxu1 }
 0x118   :  { %v354_v7 = vpop.f32.mrf.mxu0 }
 0x11b   :  { %v603_v12 = vpop.f32.mrf.mxu1 }
 0x120   :  { %v356_v10 = vpop.f32.mrf.mxu0 }
 0x121   :  { %v421_v11 = vpack.c.bf16 %v356_v10, %v354_v7 }
 0x123   :  { %702 = vmatmul.bf16.gmra.mxu2 %v421_v11 }
 0x128   :  { %v359_v13 = vpop.f32.mrf.mxu0 }
 0x130   :  { %v361_v17 = vpop.f32.mrf.mxu0 }
 0x131   :  { %v422_v18 = vpack.c.bf16 %v361_v17, %v359_v13 }
 0x133   :  { %707 = vmatmul.bf16.gmra.mxu2 %v422_v18  ;;  %v606_v18 = vpop.f32.mrf.mxu1 }
 0x146   :  { %v673_v22 = vpop.f32.mrf.mxu2 }
 0x147   :  { %v674_v24 = vadd.f32 %v673_v22, %v576_v14 }
 0x149   :  { %v717_v27 = vadd.f32 %v1474_v25, %v674_v24  ;;  %v608_v24 = vpop.f32.mrf.mxu1 }
 0x14b   :  { %v733_v31 = vmax.f32 %v717_v27, 0.0 }
 0x14e   :  { %v675_v26 = vpop.f32.mrf.mxu2 }
 0x14f   :  { %v676_v28 = vadd.f32 %v675_v26, %v578_v19 }
 0x151   :  { %v718_v30 = vadd.f32 %v1474_v25, %v676_v28 }
 0x153   :  { %v734_v32 = vmax.f32 %v718_v30, 0.0 }
 0x155   :  { %v749_v33 = vpack.c.bf16 %v734_v32, %v733_v31 }
 0x156   :  { %v678_v34 = vpop.f32.mrf.mxu2 }
 0x157   :  { %833 = vmatmul.bf16.vlgmr.msra.gmra.mxu3 %v749_v33  ;;  %v679_v36 = vadd.f32 %v678_v34, %v581_v21  ;;  %v611_v33 = vpop.f32.mrf.mxu1 }
 0x159   :  { %v719_v38 = vadd.f32 %v1474_v25, %v679_v36 }
 0x15b   :  { %v735_v41 = vmax.f32 %v719_v38, 0.0 }
 0x15e   :  { %v680_v37 = vpop.f32.mrf.mxu2 }
 0x15f   :  { %v681_v39 = vadd.f32 %v680_v37, %v583_v23  ;;  %v613_v37 = vpop.f32.mrf.mxu1 }
 0x161   :  { %v720_v40 = vadd.f32 %v1474_v25, %v681_v39 }
 0x163   :  { %v736_v42 = vmax.f32 %v720_v40, 0.0 }
 0x165   :  { %v750_v44 = vpack.c.bf16 %v736_v42, %v735_v41 }
 0x166   :  { %v683_v45 = vpop.f32.mrf.mxu2 }
 0x167   :  { %838 = vmatmul.bf16.gmra.mxu3 %v750_v44  ;;  %v684_v46 = vadd.f32 %v683_v45, %v586_v29  ;;  %v1158_v45 = vld [vmem:[%s1505_s7] ss:$0 sm:$0xff]  ;;  %s1346_s7 = smov [#allocation14]  }
 0x168   :  { %s894_s12 = sshll.u32 %s1346_s7, 4  ;;  %s895_s12 = int_to_ptr.vmem [resolvable:$true] %s894_s12 }
 0x169   :  { %v721_v49 = vadd.f32 %v1474_v25, %v684_v46 }
 0x16b   :  { %v737_v52 = vmax.f32 %v721_v49, 0.0 }
 0x16e   :  { %v685_v47 = vpop.f32.mrf.mxu2 }
 0x16f   :  { %v686_v50 = vadd.f32 %v685_v47, %v588_v35 }
 0x171   :  { %v722_v51 = vadd.f32 %v1474_v25, %v686_v50 }
 0x173   :  { %v738_v53 = vmax.f32 %v722_v51, 0.0 }
 0x175   :  { %v751_v54 = vpack.c.bf16 %v738_v53, %v737_v52 }
 0x176   :  { %v688_v55 = vpop.f32.mrf.mxu2 }
 0x177   :  { %843 = vmatmul.bf16.gmra.mxu3 %v751_v54  ;;  %v689_v57 = vadd.f32 %v688_v55, %v591_v43 }
 0x179   :  { %v723_v59 = vadd.f32 %v1474_v25, %v689_v57 }
 0x17b   :  { %v739_v63 = vmax.f32 %v723_v59, 0.0 }
 0x17e   :  { %v690_v58 = vpop.f32.mrf.mxu2 }
 0x17f   :  { %v691_v60 = vadd.f32 %v690_v58, %v593_v48 }
 0x181   :  { %v724_v61 = vadd.f32 %v1474_v25, %v691_v60 }
 0x183   :  { %v740_v0 = vmax.f32 %v724_v61, 0.0 }
 0x185   :  { %v752_v1 = vpack.c.bf16 %v740_v0, %v739_v63 }
 0x186   :  { %v693_v2 = vpop.f32.mrf.mxu2 }
 0x187   :  { %848 = vmatmul.bf16.gmra.mxu3 %v752_v1  ;;  %v694_v3 = vadd.f32 %v693_v2, %v596_v56 }
 0x189   :  { %v725_v6 = vadd.f32 %v1474_v25, %v694_v3 }
 0x18b   :  { %v741_v9 = vmax.f32 %v725_v6, 0.0 }
 0x18e   :  { %v695_v5 = vpop.f32.mrf.mxu2 }
 0x18f   :  { %v696_v7 = vadd.f32 %v695_v5, %v598_v62 }
 0x191   :  { %v726_v8 = vadd.f32 %v1474_v25, %v696_v7 }
 0x193   :  { %v742_v10 = vmax.f32 %v726_v8, 0.0 }
 0x195   :  { %v753_v11 = vpack.c.bf16 %v742_v10, %v741_v9 }
 0x196   :  { %v698_v13 = vpop.f32.mrf.mxu2 }
 0x197   :  { %853 = vmatmul.bf16.gmra.mxu3 %v753_v11  ;;  %v699_v14 = vadd.f32 %v698_v13, %v601_v4 }
 0x199   :  { %v727_v16 = vadd.f32 %v1474_v25, %v699_v14 }
 0x19b   :  { %v743_v20 = vmax.f32 %v727_v16, 0.0 }
 0x19e   :  { %v700_v15 = vpop.f32.mrf.mxu2 }
 0x19f   :  { %v701_v17 = vadd.f32 %v700_v15, %v603_v12 }
 0x1a1   :  { %v728_v19 = vadd.f32 %v1474_v25, %v701_v17 }
 0x1a3   :  { %v744_v21 = vmax.f32 %v728_v19, 0.0 }
 0x1a5   :  { %v754_v22 = vpack.c.bf16 %v744_v21, %v743_v20 }
 0x1a6   :  { %v703_v23 = vpop.f32.mrf.mxu2 }
 0x1a7   :  { %858 = vmatmul.bf16.gmra.mxu3 %v754_v22  ;;  %v704_v26 = vadd.f32 %v703_v23, %v606_v18 }
 0x1a9   :  { %v729_v28 = vadd.f32 %v1474_v25, %v704_v26 }
 0x1ab   :  { %v745_v31 = vmax.f32 %v729_v28, 0.0 }
 0x1ae   :  { %v705_v27 = vpop.f32.mrf.mxu2 }
 0x1af   :  { %v706_v29 = vadd.f32 %v705_v27, %v608_v24 }
 0x1b1   :  { %v730_v30 = vadd.f32 %v1474_v25, %v706_v29 }
 0x1b3   :  { %v746_v32 = vmax.f32 %v730_v30, 0.0 }
 0x1b5   :  { %v755_v34 = vpack.c.bf16 %v746_v32, %v745_v31 }
 0x1b6   :  { %v708_v35 = vpop.f32.mrf.mxu2 }
 0x1b7   :  { %863 = vmatmul.bf16.gmra.mxu3 %v755_v34  ;;  %v709_v36 = vadd.f32 %v708_v35, %v611_v33 }
 0x1b9   :  { %v731_v39 = vadd.f32 %v1474_v25, %v709_v36 }
 0x1bb   :  { %v747_v42 = vmax.f32 %v731_v39, 0.0 }
 0x1be   :  { %v710_v38 = vpop.f32.mrf.mxu2 }
 0x1bf   :  { %v711_v40 = vadd.f32 %v710_v38, %v613_v37 }
 0x1c1   :  { %v732_v41 = vadd.f32 %v1474_v25, %v711_v40 }
 0x1c3   :  { %v748_v43 = vmax.f32 %v732_v41, 0.0 }
 0x1c5   :  { %v756_v44 = vpack.c.bf16 %v748_v43, %v747_v42 }
 0x1c7   :  { %868 = vmatmul.bf16.gmra.mxu3 %v756_v44 }
 0x1da   :  { %v834_v46 = vpop.f32.mrf.mxu3 }
 0x1db   :  { %v835_v47 = vadd.f32 %v1158_v45, %v834_v46 }
 0x1dd   :  { %874 = vst [vmem:[#allocation14] sm:$0xff] %v835_v47 }
 0x1e2   :  { %v836_v48 = vpop.f32.mrf.mxu3 }
 0x1e3   :  { %v837_v49 = vadd.f32 %v1158_v45, %v836_v48 }
 0x1e5   :  { %875 = vst [vmem:[#allocation14 + $0x8] sm:$0xff] %v837_v49 }
 0x1ea   :  { %v839_v50 = vpop.f32.mrf.mxu3 }
 0x1eb   :  { %v840_v51 = vadd.f32 %v1158_v45, %v839_v50 }
 0x1ed   :  { %876 = vst [vmem:[#allocation14 + $0x10] sm:$0xff] %v840_v51 }
 0x1f2   :  { %v841_v52 = vpop.f32.mrf.mxu3 }
 0x1f3   :  { %v842_v53 = vadd.f32 %v1158_v45, %v841_v52 }
 0x1f5   :  { %877 = vst [vmem:[#allocation14 + $0x18] sm:$0xff] %v842_v53 }
 0x1fa   :  { %v844_v25 = vpop.f32.mrf.mxu3 }
 0x1fb   :  { %v845_v54 = vadd.f32 %v1158_v45, %v844_v25 }
 0x1fd   :  { %878 = vst [vmem:[#allocation14 + $0x20] sm:$0xff] %v845_v54 }
 0x202   :  { %v846_v55 = vpop.f32.mrf.mxu3 }
 0x203   :  { %v847_v56 = vadd.f32 %v1158_v45, %v846_v55 }
 0x205   :  { %879 = vst [vmem:[#allocation14 + $0x28] sm:$0xff] %v847_v56 }
 0x20a   :  { %v849_v57 = vpop.f32.mrf.mxu3 }
 0x20b   :  { %v850_v58 = vadd.f32 %v1158_v45, %v849_v57 }
 0x20d   :  { %880 = vst [vmem:[#allocation14 + $0x30] sm:$0xff] %v850_v58 }
 0x212   :  { %v851_v59 = vpop.f32.mrf.mxu3 }
 0x213   :  { %v852_v60 = vadd.f32 %v1158_v45, %v851_v59 }
 0x215   :  { %881 = vst [vmem:[#allocation14 + $0x38] sm:$0xff] %v852_v60 }
 0x21a   :  { %v854_v61 = vpop.f32.mrf.mxu3 }
 0x21b   :  { %v855_v62 = vadd.f32 %v1158_v45, %v854_v61 }
 0x21d   :  { %882 = vst [vmem:[#allocation14 + $0x40] sm:$0xff] %v855_v62 }
 0x222   :  { %v856_v63 = vpop.f32.mrf.mxu3 }
 0x223   :  { %v857_v0 = vadd.f32 %v1158_v45, %v856_v63 }
 0x225   :  { %883 = vst [vmem:[#allocation14 + $0x48] sm:$0xff] %v857_v0 }
 0x22a   :  { %v859_v1 = vpop.f32.mrf.mxu3 }
 0x22b   :  { %v860_v2 = vadd.f32 %v1158_v45, %v859_v1 }
 0x22d   :  { %884 = vst [vmem:[#allocation14 + $0x50] sm:$0xff] %v860_v2 }
 0x232   :  { %v861_v3 = vpop.f32.mrf.mxu3 }
 0x233   :  { %v862_v4 = vadd.f32 %v1158_v45, %v861_v3 }
 0x235   :  { %885 = vst [vmem:[#allocation14 + $0x58] sm:$0xff] %v862_v4 }
 0x23a   :  { %v864_v5 = vpop.f32.mrf.mxu3 }
 0x23b   :  { %v865_v6 = vadd.f32 %v1158_v45, %v864_v5 }
 0x23d   :  { %886 = vst [vmem:[#allocation14 + $0x60] sm:$0xff] %v865_v6 }
 0x242   :  { %v866_v7 = vpop.f32.mrf.mxu3 }
 0x243   :  { %v867_v8 = vadd.f32 %v1158_v45, %v866_v7 }
 0x245   :  { %887 = vst [vmem:[#allocation14 + $0x68] sm:$0xff] %v867_v8 }
 0x24a   :  { %v869_v9 = vpop.f32.mrf.mxu3 }
 0x24b   :  { %v870_v10 = vadd.f32 %v1158_v45, %v869_v9 }
 0x24d   :  { %888 = vst [vmem:[#allocation14 + $0x70] sm:$0xff] %v870_v10 }
 0x252   :  { %v871_v11 = vpop.f32.mrf.mxu3 }
 0x253   :  { %v872_v12 = vadd.f32 %v1158_v45, %v871_v11 }
 0x255   :  { %889 = vst [vmem:[#allocation14 + $0x78] sm:$0xff] %v872_v12 }
 0x256   :  { %902 = dma.vmem_to_hbm [thread:$0]  %s895_s12, 2048, %s897_s15, [#allocation5], %s1347_s16, %s1347_s16, %s1348_s17  }
 0x257   :  { %1335 = dma.done.wait [#allocation5], 2048  }
 0x258   :  { %1336 = vsyncadd [#allocation5], 4294965248 }
 0x259   :  { %907 = vsyncpa [#allocation4], 1 }
 0x25a   :  { %908 = vsyncpa [#allocation7], 1 }
 0x25b   :  { %909 = vsyncpa [#allocation10], 1 }
 0x25c   :  { %910 = vsyncpa [#allocation13], 1 }
 0x25d   :  { %911 = vsyncpa [#allocation5], 1 }

</bundles_post_ra>
